<compile_context>
chip_gen: v6e
topology: v6e:2x2x1
jax: 0.10.0
libtpu: 0.0.40
codegen_flags: <defaults>
</compile_context>

<pallas_src>
import jax
import jax.numpy as jnp
from jax.experimental import pallas as pl
from jax.experimental.pallas import tpu as pltpu


def _round_up(x: int, m: int) -> int:
    return ((x + m - 1) // m) * m


def _lora_linear_kernel(x_ref, w_ref, b_ref, xa_ref, lb_ref, o_ref, acc_ref):
    """One (tm, tn) output tile, accumulated over the K grid axis.

    x_ref : (tm, tk)      activation tile
    w_ref : (tk, tn)      base weight tile, already in (K, N) layout
    b_ref : (1, tn)       bias tile (f32)
    xa_ref: (tm, r_pad)   precomputed x @ A^T tile (resident across K/N)
    lb_ref: (r_pad, tn)   scaling * lora_b in (r, N) layout
    acc_ref: (tm, tn) f32 accumulator, resident across the K axis
    """
    k = pl.program_id(2)

    @pl.when(k == 0)
    def _init():
        # Fold the bias into the accumulator init (saves a full-tile add later).
        acc_ref[...] = jnp.broadcast_to(b_ref[...].astype(jnp.float32),
                                        acc_ref.shape)

    # Base path: accumulate x @ W over K. RHS is lane-dense (K, N) -> no transpose.
    acc_ref[...] += jnp.dot(x_ref[...], w_ref[...],
                            preferred_element_type=jnp.float32)

    @pl.when(k == pl.num_programs(2) - 1)
    def _finalize():
        # Scaling is already folded into lb_ref; xa was computed in the wrapper.
        lora = jnp.dot(xa_ref[...], lb_ref[...],
                       preferred_element_type=jnp.float32)
        o_ref[...] = (acc_ref[...] + lora).astype(o_ref.dtype)


def prepare_lora_linear_params(weight, bias, lora_a, lora_b, scaling, *,
                               operand_dtype=None, tm_max=None, tn=None, tk=None):
    """One-time (load-time) parameter prep: transpose/pad/cast the weights.

    weight: (N, K), bias: (N,) or None, lora_a: (r, K), lora_b: (N, r).
    """
    N, K = weight.shape
    r, K2 = lora_a.shape
    assert K2 == K
    assert lora_b.shape == (N, r)
    assert r > 0, "r == 0 (LoRA disabled) is not supported by this kernel"

    op_dtype = jnp.dtype(operand_dtype) if operand_dtype is not None else jnp.dtype(weight.dtype)
    op_bytes = op_dtype.itemsize
    sub = 16 if op_bytes <= 2 else 8  # sublane quantum (packed for bf16)

    rN = _round_up(N, 128)
    rK = _round_up(K, 128)
    r_pad = _round_up(r, sub)

    if op_bytes <= 2:  # bf16-class operands: big tiles, MXU-friendly
        tm_max = tm_max or 512
        tn = tn or min(1024, rN)
        tk = tk or min(1024, rK)
    else:              # f32 operands: keep tk modest (v5e scoped VMEM / bandwidth)
        tm_max = tm_max or 256
        tn = tn or min(1024, rN)
        tk = tk or min(512, rK)

    # v7x megacore: make sure the N axis has >= 2 tiles for mid-size N so
    # small-M (decode) problems can still use both TensorCores.
    if rN // tn < 2 and rN >= 256:
        tn = ((rN // 128 + 1) // 2) * 128

    # Keep double-buffered VMEM within a budget that is safe on v7x (64 MiB
    # physical) and leaves headroom for compiler scratch.
    budget = 44 * 1024 * 1024

    def vmem_est(tm_, tn_, tk_):
        ins = (2 * (tm_ * tk_ + tk_ * tn_ + tm_ * r_pad + r_pad * tn_) * op_bytes
               + 2 * tn_ * 4)                    # double-buffered inputs (+bias f32)
        outs = 2 * tm_ * tn_ * 4                 # double-buffered output (worst case f32)
        acc = tm_ * tn_ * 4                      # resident accumulator
        return ins + outs + acc

    while vmem_est(tm_max, tn, tk) > budget:
        if tk > 128:
            tk = max(128, _round_up(tk // 2, 128))
        elif tn > 128:
            tn = max(128, _round_up(tn // 2, 128))
        elif tm_max > sub:
            tm_max = max(sub, tm_max // 2)
        else:
            break

    Np = _round_up(N, tn)
    Kp = _round_up(K, tk)

    f32 = jnp.float32
    # Pre-transpose once so the kernel sees lane-dense (K, N) / (r, N) operands.
    w_kn = weight.T.astype(op_dtype)                                   # (K, N)
    if (Kp, Np) != (K, N):
        w_kn = jnp.pad(w_kn, ((0, Kp - K), (0, Np - N)))
    if bias is None:
        bias = jnp.zeros((N,), f32)
    bias_2d = bias.astype(f32).reshape(1, N)
    if Np != N:
        bias_2d = jnp.pad(bias_2d, ((0, 0), (0, Np - N)))
    a_kr = lora_a.T.astype(op_dtype)                                   # (K, r_pad)
    if r_pad != r:
        a_kr = jnp.pad(a_kr, ((0, 0), (0, r_pad - r)))
    lb_rn = (lora_b.astype(f32) * jnp.asarray(scaling, f32)).T.astype(op_dtype)
    if (r_pad, Np) != (r, N):
        lb_rn = jnp.pad(lb_rn, ((0, r_pad - r), (0, Np - N)))          # (r_pad, N)

    vmem_limit = int(min(56 * 1024 * 1024,
                         max(32 * 1024 * 1024,
                             vmem_est(tm_max, tn, tk) + 8 * 1024 * 1024)))

    return dict(w_kn=w_kn, bias_2d=bias_2d, a_kr=a_kr, lb_rn=lb_rn,
                op_dtype=op_dtype, N=N, K=K, Np=Np, Kp=Kp,
                tm_max=tm_max, tn=tn, tk=tk, r_pad=r_pad, sub=sub,
                vmem_limit=vmem_limit)


def lora_linear_forward(x, params):
    """x: (..., K) -> (..., N). Uses parameters prepared by prepare_lora_linear_params."""
    orig_shape = x.shape
    K = params["K"]
    assert orig_shape[-1] == K
    x2 = x.reshape(-1, K)
    M = x2.shape[0]

    N, Np, Kp = params["N"], params["Np"], params["Kp"]
    tn, tk, r_pad, sub = params["tn"], params["tk"], params["r_pad"], params["sub"]
    op_dtype = params["op_dtype"]
    out_dtype = x.dtype

    tm = min(params["tm_max"], _round_up(M, sub))
    Mp = _round_up(M, tm)

    x_op = x2.astype(op_dtype)
    # LoRA down-projection (x @ A^T) done once per call as a tiny matmul instead
    # of burning one MXU weight pass per K step (and per N tile) inside the kernel.
    xa = jnp.dot(x_op, params["a_kr"],
                 preferred_element_type=jnp.float32).astype(op_dtype)   # (M, r_pad)

    if (Mp, Kp) != (M, K):
        x_op = jnp.pad(x_op, ((0, Mp - M), (0, Kp - K)))
    if Mp != M:
        xa = jnp.pad(xa, ((0, Mp - M), (0, 0)))

    grid = (Mp // tm, Np // tn, Kp // tk)

    op_bytes = op_dtype.itemsize
    cost = pl.CostEstimate(
        flops=2 * M * N * K + 2 * M * r_pad * N,
        transcendentals=0,
        bytes_accessed=((x_op.size + params["w_kn"].size + xa.size
                         + params["lb_rn"].size) * op_bytes
                        + params["bias_2d"].size * 4
                        + Mp * Np * jnp.dtype(out_dtype).itemsize),
    )

    out = pl.pallas_call(
        _lora_linear_kernel,
        out_shape=jax.ShapeDtypeStruct((Mp, Np), out_dtype),
        grid_spec=pltpu.PrefetchScalarGridSpec(
            num_scalar_prefetch=0,
            grid=grid,
            in_specs=[
                pl.BlockSpec((tm, tk), lambda i, j, k: (i, k)),      # x tile
                pl.BlockSpec((tk, tn), lambda i, j, k: (k, j)),      # W^T tile (K, N)
                pl.BlockSpec((1, tn), lambda i, j, k: (0, j)),       # bias tile
                pl.BlockSpec((tm, r_pad), lambda i, j, k: (i, 0)),   # x @ A^T tile
                pl.BlockSpec((r_pad, tn), lambda i, j, k: (0, j)),   # scaling*B^T tile
            ],
            out_specs=pl.BlockSpec((tm, tn), lambda i, j, k: (i, j)),
            scratch_shapes=[pltpu.VMEM((tm, tn), jnp.float32)],      # base accumulator
        ),
        compiler_params=pltpu.CompilerParams(
            dimension_semantics=("parallel", "parallel", "arbitrary"),
            vmem_limit_bytes=params["vmem_limit"]),
        cost_estimate=cost,
    )(x_op, params["w_kn"], params["bias_2d"], xa, params["lb_rn"])

    out = out[:M, :N]
    return out.reshape(orig_shape[:-1] + (N,))


def lora_column_parallel_linear(x, weight, bias, lora_a, lora_b, scaling, *,
                                operand_dtype=None):
    """Convenience one-shot wrapper (prep + forward). Prefer hoisting prepare()."""
    params = prepare_lora_linear_params(weight, bias, lora_a, lora_b, scaling,
                                        operand_dtype=operand_dtype)
    return lora_linear_forward(x, params)


def _reference(x, weight, bias, lora_a, lora_b, scaling):
    base = x @ weight.T + bias[None, :]
    lora = (x @ lora_a.T) @ lora_b.T
    return base + scaling * lora


if __name__ == "__main__":
    # Module hyperparameters (small, consistent with __init__ shapes).
    in_features = 32
    out_features = 64
    r = 4
    lora_alpha = 1.0
    scaling = lora_alpha / r
    batch = 8

    key = jax.random.PRNGKey(0)
    kx, kw, kb, ka, klb = jax.random.split(key, 5)

    # Deterministic synthetic parameter init (matching __init__ shapes):
    #   weight: (out_features, in_features), bias: (out_features,)
    #   lora_a: (r, in_features), lora_b: (out_features, r)
    # lora_b is nonzero here so the LoRA path is actually exercised
    # (the module inits it to zeros; values here are synthetic).
    w_std = (2.0 / (in_features + out_features)) ** 0.5
    weight = jax.random.normal(kw, (out_features, in_features), jnp.float32) * w_std
    bias = jax.random.normal(kb, (out_features,), jnp.float32) * 0.01
    a_std = (2.0 / (1.0 + 5.0)) ** 0.5 / (in_features ** 0.5)
    lora_a = jax.random.normal(ka, (r, in_features), jnp.float32) * a_std
    lora_b = jax.random.normal(klb, (out_features, r), jnp.float32) * 0.1

    x = jax.random.normal(kx, (batch, in_features), jnp.float32)
    ref = _reference(x, weight, bias, lora_a, lora_b, scaling)

    # f32 operand path (parameters prepared once, reused for every forward).
    params_f32 = prepare_lora_linear_params(weight, bias, lora_a, lora_b, scaling)
    out = jax.block_until_ready(lora_linear_forward(x, params_f32))
    assert out.shape == (batch, out_features)
    assert jnp.allclose(out, ref, atol=2e-4, rtol=2e-4), "f32 mismatch vs reference"

    # bf16 operand path (f32 MXU accumulation) — looser tolerance expected.
    params_bf16 = prepare_lora_linear_params(weight, bias, lora_a, lora_b, scaling,
                                             operand_dtype=jnp.bfloat16)
    out_bf16 = jax.block_until_ready(lora_linear_forward(x, params_bf16))
    assert out_bf16.shape == (batch, out_features)
    assert jnp.allclose(out_bf16, ref, atol=5e-2, rtol=5e-2), "bf16 mismatch vs reference"

    # TODO(synk): mp_copy / mp_gather (tensor-model-parallel collectives) are identity
    # on a single device; multi-device gather_output would need a remote-DMA all-gather.
    print("KERNEL_OK")
</pallas_src>

<mosaic_0001>
module attributes {stable_mosaic.version = 11 : i64} {
  func.func @_lora_linear_kernel(%arg0: i32, %arg1: i32, %arg2: i32, %arg3: memref<8x128xf32, #tpu.memory_space<vmem>>, %arg4: memref<128x128xf32, #tpu.memory_space<vmem>>, %arg5: memref<1x128xf32, #tpu.memory_space<vmem>>, %arg6: memref<8x8xf32, #tpu.memory_space<vmem>>, %arg7: memref<8x128xf32, #tpu.memory_space<vmem>>, %arg8: memref<8x128xf32, #tpu.memory_space<vmem>>, %arg9: memref<8x128xf32, #tpu.memory_space<vmem>>) attributes {dimension_semantics = [#tpu.dimension_semantics<parallel>, #tpu.dimension_semantics<parallel>, #tpu.dimension_semantics<arbitrary>], iteration_bounds = array<i64: 1, 1, 1>, scalar_prefetch = 0 : i64, scratch_operands = 1 : i64, tpu.core_type = #tpu.core_type<tc>, window_params = [{transform_indices = @transform_0, window_bounds = array<i64: 8, 128>}, {transform_indices = @transform_1, window_bounds = array<i64: 128, 128>}, {transform_indices = @transform_2, window_bounds = array<i64: 1, 128>}, {transform_indices = @transform_3, window_bounds = array<i64: 8, 8>}, {transform_indices = @transform_4, window_bounds = array<i64: 8, 128>}, {transform_indices = @transform_5, window_bounds = array<i64: 8, 128>}]} {
    %c0_i32 = arith.constant 0 : i32
    %0 = arith.cmpi eq, %arg2, %c0_i32 : i32
    %1 = arith.extui %0 : i1 to i32
    %c0_i32_0 = arith.constant 0 : i32
    %2 = arith.cmpi ne, %1, %c0_i32_0 : i32
    scf.if %2 {
      %c0_10 = arith.constant 0 : index
      %c0_11 = arith.constant 0 : index
      %12 = vector.load %arg5[%c0_10, %c0_11] : memref<1x128xf32, #tpu.memory_space<vmem>>, vector<1x128xf32>
      %13 = vector.shape_cast %12 : vector<1x128xf32> to vector<1x128xf32>
      %14 = vector.broadcast %13 : vector<1x128xf32> to vector<8x128xf32>
      %c0_12 = arith.constant 0 : index
      %c0_13 = arith.constant 0 : index
      %15 = vector.load %arg9[%c0_12, %c0_13] : memref<8x128xf32, #tpu.memory_space<vmem>>, vector<8x128xf32>
      tpu.vector_store %arg9[%c0_12, %c0_13], %14 {strides = array<i32>} : memref<8x128xf32, #tpu.memory_space<vmem>>, vector<8x128xf32>,
    } else {
    }
    %c0 = arith.constant 0 : index
    %c0_1 = arith.constant 0 : index
    %3 = vector.load %arg9[%c0, %c0_1] : memref<8x128xf32, #tpu.memory_space<vmem>>, vector<8x128xf32>
    %c0_2 = arith.constant 0 : index
    %c0_3 = arith.constant 0 : index
    %4 = vector.load %arg3[%c0_2, %c0_3] : memref<8x128xf32, #tpu.memory_space<vmem>>, vector<8x128xf32>
    %c0_4 = arith.constant 0 : index
    %c0_5 = arith.constant 0 : index
    %5 = vector.load %arg4[%c0_4, %c0_5] : memref<128x128xf32, #tpu.memory_space<vmem>>, vector<128x128xf32>
    %cst = arith.constant dense<0.000000e+00> : vector<8x128xf32>
    %6 = tpu.matmul %4, %5, %cst {dimension_numbers = #tpu.dot_dimension_numbers<[1], [0], [0], [1], [0, 0, 1, 1], [], []>} : vector<8x128xf32>, vector<128x128xf32>, vector<8x128xf32> -> vector<8x128xf32>
    %7 = arith.addf %3, %6 : vector<8x128xf32>
    %c0_6 = arith.constant 0 : index
    %c0_7 = arith.constant 0 : index
    %8 = vector.load %arg9[%c0_6, %c0_7] : memref<8x128xf32, #tpu.memory_space<vmem>>, vector<8x128xf32>
    tpu.vector_store %arg9[%c0_6, %c0_7], %7 {strides = array<i32>} : memref<8x128xf32, #tpu.memory_space<vmem>>, vector<8x128xf32>,
    %c0_i32_8 = arith.constant 0 : i32
    %9 = arith.cmpi eq, %arg2, %c0_i32_8 : i32
    %10 = arith.extui %9 : i1 to i32
    %c0_i32_9 = arith.constant 0 : i32
    %11 = arith.cmpi ne, %10, %c0_i32_9 : i32
    scf.if %11 {
      %c0_10 = arith.constant 0 : index
      %c0_11 = arith.constant 0 : index
      %12 = vector.load %arg6[%c0_10, %c0_11] : memref<8x8xf32, #tpu.memory_space<vmem>>, vector<8x8xf32>
      %c0_12 = arith.constant 0 : index
      %c0_13 = arith.constant 0 : index
      %13 = vector.load %arg7[%c0_12, %c0_13] : memref<8x128xf32, #tpu.memory_space<vmem>>, vector<8x128xf32>
      %cst_14 = arith.constant dense<0.000000e+00> : vector<8x128xf32>
      %14 = tpu.matmul %12, %13, %cst_14 {dimension_numbers = #tpu.dot_dimension_numbers<[1], [0], [0], [1], [0, 0, 1, 1], [], []>} : vector<8x8xf32>, vector<8x128xf32>, vector<8x128xf32> -> vector<8x128xf32>
      %c0_15 = arith.constant 0 : index
      %c0_16 = arith.constant 0 : index
      %15 = vector.load %arg9[%c0_15, %c0_16] : memref<8x128xf32, #tpu.memory_space<vmem>>, vector<8x128xf32>
      %16 = arith.addf %15, %14 : vector<8x128xf32>
      %c0_17 = arith.constant 0 : index
      %c0_18 = arith.constant 0 : index
      %17 = vector.load %arg8[%c0_17, %c0_18] : memref<8x128xf32, #tpu.memory_space<vmem>>, vector<8x128xf32>
      tpu.vector_store %arg8[%c0_17, %c0_18], %16 {strides = array<i32>} : memref<8x128xf32, #tpu.memory_space<vmem>>, vector<8x128xf32>,
    } else {
    }
    return
  }
  func.func @transform_0(%arg0: i32, %arg1: i32, %arg2: i32) -> (i32, i32) {
    %c0_i32 = arith.constant 0 : i32
    return %arg0, %arg2 : i32, i32
  }
  func.func @transform_1(%arg0: i32, %arg1: i32, %arg2: i32) -> (i32, i32) {
    %c0_i32 = arith.constant 0 : i32
    return %arg2, %arg1 : i32, i32
  }
  func.func @transform_2(%arg0: i32, %arg1: i32, %arg2: i32) -> (i32, i32) {
    %c0_i32 = arith.constant 0 : i32
    %c0_i32_0 = arith.constant 0 : i32
    return %c0_i32, %arg1 : i32, i32
  }
  func.func @transform_3(%arg0: i32, %arg1: i32, %arg2: i32) -> (i32, i32) {
    %c0_i32 = arith.constant 0 : i32
    %c0_i32_0 = arith.constant 0 : i32
    return %arg0, %c0_i32 : i32, i32
  }
  func.func @transform_4(%arg0: i32, %arg1: i32, %arg2: i32) -> (i32, i32) {
    %c0_i32 = arith.constant 0 : i32
    %c0_i32_0 = arith.constant 0 : i32
    return %c0_i32, %arg1 : i32, i32
  }
  func.func @transform_5(%arg0: i32, %arg1: i32, %arg2: i32) -> (i32, i32) {
    %c0_i32 = arith.constant 0 : i32
    return %arg0, %arg1 : i32, i32
  }
}

</mosaic_0001>

<bundles_post_ra>
// kernel: tpu_custom_call.1
= control target key start
LH: loop header
LB: loop body
LE: loop exit
PB: predicated region body
PF: predicated region fallthrough
CT: control target
= control target key end

     0   :  { %10 = vsyncpa [#allocation4], 0  ;;  %s506_s0 = inlined_call_operand.hbm [shape: f32[8,128], index: 0, kind: input, shape index: {}]   ;;  %s507_s1 = inlined_call_operand.hbm [shape: f32[128,128], index: 1, kind: input, shape index: {}]   ;;  %s508_s2 = inlined_call_operand.vmem [shape: f32[1,128], index: 2, kind: input, shape index: {}]   ;;  %s509_s3 = inlined_call_operand.hbm [shape: f32[8,8], index: 3, kind: input, shape index: {}]   ;;  %s510_s4 = inlined_call_operand.hbm [shape: f32[8,128], index: 4, kind: input, shape index: {}]   ;;  %s511_s5 = inlined_call_operand.hbm [shape: f32[8,128], index: 5, kind: output, shape index: {}]  }
   0x1   :  { %11 = vsyncpa [#allocation7], 0 }
   0x2   :  { %12 = vsyncpa [#allocation10], 0 }
   0x3   :  { %13 = vsyncpa [#allocation5], 0  ;;  %s449_s18 = smov [#allocation6]  }
   0x4   :  { %s29_s19 = sshll.u32 %s449_s18, 4  ;;  %s30_s19 = int_to_ptr.vmem [resolvable:$true] %s29_s19 }
   0x5   :  { %s349_s20 = scalar_lea.vmem %s30_s19, 2048  ;;  %p354_p1 = scmp.lt.s32.totalorder %s30_s19, %s30_s19 }
   0x6   :  { %p350_p0 = scmp.ne.s32.totalorder %s30_s19, %s349_s20  ;;  %p355_p2 = scmp.lt.s32.totalorder %s349_s20, %s349_s20 }
   0x8   :  { %p356_p3 = por %p355_p2, %p354_p1 }
   0xa   :  { %p357_p4 = pnand %p356_p3, %p350_p0 }
   0xc   :  { %360 = shalt.err (!%p357_p4)
}
   0xd   :  { %s450_s21 = smov 128   ;;  %s451_s22 = smov 8  }
   0xe   :  { %35 = dma.hbm_to_vmem [thread:$0]  %s507_s1, 2048, %s30_s19, [#allocation7], %s450_s21, %s450_s21, %s451_s22  }
   0xf   :  { %s452_s25 = smov [#allocation3]   ;;  %s453_s27 = smov [#allocation8]  }
  0x10   :  { %s20_s26 = sshll.u32 %s452_s25, 4  ;;  %s44_s28 = sshll.u32 %s453_s27, 4  ;;  %s21_s26 = int_to_ptr.vmem [resolvable:$true] %s20_s26  ;;  %s45_s28 = int_to_ptr.vmem [resolvable:$true] %s44_s28 }
  0x11   :  { %s369_s29 = scalar_lea.vmem %s21_s26, 128  ;;  %p374_p6 = scmp.lt.s32.totalorder %s21_s26, %s21_s26 }
  0x12   :  { %p370_p5 = scmp.ne.s32.totalorder %s21_s26, %s369_s29  ;;  %p375_p7 = scmp.lt.s32.totalorder %s369_s29, %s369_s29 }
  0x14   :  { %p376_p8 = por %p375_p7, %p374_p6 }
  0x16   :  { %p377_p9 = pnand %p376_p8, %p370_p5 }
  0x18   :  { %380 = shalt.err (!%p377_p9)
}
  0x19   :  { %23 = dma.hbm_to_vmem [thread:$0]  %s506_s0, 128, %s21_s26, [#allocation4]  }
  0x1a   :  { %s389_s7 = scalar_lea.vmem %s45_s28, 128  ;;  %p394_p11 = scmp.lt.s32.totalorder %s45_s28, %s45_s28 }
  0x1b   :  { %p390_p10 = scmp.ne.s32.totalorder %s45_s28, %s389_s7  ;;  %p395_p12 = scmp.lt.s32.totalorder %s389_s7, %s389_s7 }
  0x1d   :  { %p396_p13 = por %p395_p12, %p394_p11 }
  0x1f   :  { %p397_p0 = pnand %p396_p13, %p390_p10 }
  0x21   :  { %400 = shalt.err (!%p397_p0)
}
  0x22   :  { %47 = dma.hbm_to_vmem [thread:$0]  %s509_s3, 128, %s45_s28, [#allocation7]  }
  0x23   :  { %s454_s9 = smov [#allocation9]  }
  0x24   :  { %s54_s10 = sshll.u32 %s454_s9, 4  ;;  %s55_s10 = int_to_ptr.vmem [resolvable:$true] %s54_s10 }
  0x25   :  { %s409_s11 = scalar_lea.vmem %s55_s10, 128  ;;  %p414_p2 = scmp.lt.s32.totalorder %s55_s10, %s55_s10 }
  0x26   :  { %p410_p1 = scmp.ne.s32.totalorder %s55_s10, %s409_s11  ;;  %p415_p3 = scmp.lt.s32.totalorder %s409_s11, %s409_s11 }
  0x28   :  { %p416_p4 = por %p415_p3, %p414_p2 }
  0x2a   :  { %p417_p5 = pnand %p416_p4, %p410_p1 }
  0x2c   :  { %420 = shalt.err (!%p417_p5)
}
  0x2d   :  { %57 = dma.hbm_to_vmem [thread:$0]  %s510_s4, 128, %s55_s10, [#allocation10]  }
  0x2e   :  { %441 = dma.done.wait [#allocation4], 128  }
  0x2f   :  { %442 = vsyncadd [#allocation4], 4294967168 }
  0x30   :  { %443 = dma.done.wait [#allocation7], 2176  }
  0x31   :  { %444 = vsyncadd [#allocation7], 4294965120 }
  0x32   :  { %445 = dma.done.wait [#allocation10], 128  }
  0x33   :  { %446 = vsyncadd [#allocation10], 4294967168  ;;  %v455_v0 = vmov 0.0   ;;  %vm456_vm0 = vmmov 0   ;;  %v99_v1 = vld [vmem:[#allocation6 + $0x78] sm:$0xff]  ;;  %v98_v2 = vld [vmem:[#allocation6 + $0x70] sm:$0xff] }
  0x34   :  { %292 = vmatprep.subr.mxu0 %v455_v0  ;;  %327 = vmatprep.subr.mxu1 %v455_v0  ;;  %v97_v3 = vld [vmem:[#allocation6 + $0x68] sm:$0xff]  ;;  %v96_v4 = vld [vmem:[#allocation6 + $0x60] sm:$0xff]  ;;  %vm177_vm1 = vcmask 64512   ;;  %v95_v6 = vld [vmem:[#allocation6 + $0x58] sm:$0xff]  ;;  %s457_s13 = smov [#allocation11]  }
  0x35   :  { %324 = vmatprep.mubr.msk.f32.mxu0 %vm456_vm0, %v455_v0  ;;  %329 = vmatprep.mubr.msk.f32.mxu1 %vm456_vm0, %v455_v0  ;;  %v176_v5 = vld [vmem:[#allocation9] sm:$0xff]  ;;  %v175_v7 = vld [vmem:[#allocation8] sm:$0xff]  ;;  %v94_v8 = vld [vmem:[#allocation6 + $0x50] sm:$0xff]  ;;  %s260_s14 = sshll.u32 %s457_s13, 4  ;;  %s261_s14 = int_to_ptr.vmem [resolvable:$true] %s260_s14 }
  0x36   :  { %293 = vmatpush3.msra.mxu0 %v99_v1  ;;  %328 = vmatpush3.msra.mxu1 %v176_v5  ;;  %v93_v9 = vld [vmem:[#allocation6 + $0x48] sm:$0xff]  ;;  %v92_v10 = vld [vmem:[#allocation6 + $0x40] sm:$0xff]  ;;  %v91_v11 = vld [vmem:[#allocation6 + $0x38] sm:$0xff]  ;;  %s421_s15 = scalar_lea.vmem %s261_s14, 128  ;;  %p426_p7 = scmp.lt.s32.totalorder %s261_s14, %s261_s14 }
  0x37   :  { %294 = vmatprep.subr.mxu0 %v455_v0  ;;  %330 = vmatmul.mubr.msk.f32.vlgmr.msra.gmra.mxu1 %vm177_vm1, %v175_v7  ;;  %v90_v12 = vld [vmem:[#allocation6 + $0x30] sm:$0xff]  ;;  %v89_v13 = vld [vmem:[#allocation6 + $0x28] sm:$0xff]  ;;  %v88_v14 = vld [vmem:[#allocation6 + $0x20] sm:$0xff]  ;;  %p422_p6 = scmp.ne.s32.totalorder %s261_s14, %s421_s15  ;;  %p427_p8 = scmp.lt.s32.totalorder %s421_s15, %s421_s15 }
  0x38   :  { %295 = vmatpush3.msra.mxu0 %v98_v2  ;;  %v87_v15 = vld [vmem:[#allocation6 + $0x18] sm:$0xff]  ;;  %v86_v16 = vld [vmem:[#allocation6 + $0x10] sm:$0xff]  ;;  %v85_v17 = vld [vmem:[#allocation6 + $0x8] sm:$0xff] }
  0x39   :  { %296 = vmatprep.subr.mxu0 %v455_v0  ;;  %v84_v18 = vld [vmem:[#allocation6] sm:$0xff]  ;;  %v83_v19 = vld [vmem:[#allocation3] sm:$0xff]  ;;  %p428_p9 = por %p427_p8, %p426_p7 }
  0x3a   :  { %297 = vmatpush3.msra.mxu0 %v97_v3  ;;  %v271_v22 = vld [vmem:[%s508_s2] ss:$0 sm:$0xff] }
  0x3b   :  { %298 = vmatprep.subr.mxu0 %v455_v0  ;;  %p429_p10 = pnand %p428_p9, %p422_p6 }
  0x3c   :  { %299 = vmatpush3.msra.mxu0 %v96_v4 }
  0x3d   :  { %300 = vmatprep.subr.mxu0 %v455_v0 }
  0x3e   :  { %301 = vmatpush3.msra.mxu0 %v95_v6 }
  0x3f   :  { %302 = vmatprep.subr.mxu0 %v455_v0 }
  0x40   :  { %303 = vmatpush3.msra.mxu0 %v94_v8 }
  0x41   :  { %304 = vmatprep.subr.mxu0 %v455_v0 }
  0x42   :  { %305 = vmatpush3.msra.mxu0 %v93_v9 }
  0x43   :  { %306 = vmatprep.subr.mxu0 %v455_v0 }
  0x44   :  { %307 = vmatpush3.msra.mxu0 %v92_v10 }
  0x45   :  { %308 = vmatprep.subr.mxu0 %v455_v0 }
  0x46   :  { %309 = vmatpush3.msra.mxu0 %v91_v11 }
  0x47   :  { %310 = vmatprep.subr.mxu0 %v455_v0 }
  0x48   :  { %311 = vmatpush3.msra.mxu0 %v90_v12 }
  0x49   :  { %312 = vmatprep.subr.mxu0 %v455_v0 }
  0x4a   :  { %313 = vmatpush3.msra.mxu0 %v89_v13 }
  0x4b   :  { %314 = vmatprep.subr.mxu0 %v455_v0 }
  0x4c   :  { %315 = vmatpush3.msra.mxu0 %v88_v14 }
  0x4d   :  { %316 = vmatprep.subr.mxu0 %v455_v0 }
  0x4e   :  { %317 = vmatpush3.msra.mxu0 %v87_v15 }
  0x4f   :  { %318 = vmatprep.subr.mxu0 %v455_v0 }
  0x50   :  { %319 = vmatpush3.msra.mxu0 %v86_v16 }
  0x51   :  { %320 = vmatprep.subr.mxu0 %v455_v0 }
  0x52   :  { %321 = vmatpush3.msra.mxu0 %v85_v17 }
  0x53   :  { %322 = vmatprep.subr.mxu0 %v455_v0 }
  0x54   :  { %323 = vmatpush3.msra.mxu0 %v84_v18 }
  0x55   :  { %325 = vmatmul.mubr.f32.vlgmr.msra.gmra.mxu0 %v83_v19 }
  0xf7   :  { %v247_v20 = vpop.f32.mrf.mxu1 }
  0xf9   :  { %v331_v21 = vpop.f32.mrf.mxu1 }
 0x115   :  { %v166_v23 = vpop.f32.mrf.mxu0 }
 0x116   :  { %v170_v24 = vadd.f32 %v271_v22, %v166_v23 }
 0x117   :  { %v326_v25 = vpop.f32.mrf.mxu0 }
 0x118   :  { %v252_v26 = vadd.f32 %v247_v20, %v170_v24 }
 0x11a   :  { %253 = vst [vmem:[#allocation11] sm:$0xff] %v252_v26 }
 0x11b   :  { %432 = shalt.err (!%p429_p10)
}
 0x11c   :  { %263 = dma.vmem_to_hbm [thread:$0]  %s261_s14, 128, %s511_s5, [#allocation5]  }
 0x11d   :  { %447 = dma.done.wait [#allocation5], 128  }
 0x11e   :  { %448 = vsyncadd [#allocation5], 4294967168 }
 0x11f   :  { %267 = vsyncpa [#allocation4], 1 }
 0x120   :  { %268 = vsyncpa [#allocation7], 1 }
 0x121   :  { %269 = vsyncpa [#allocation10], 1 }
 0x122   :  { %270 = vsyncpa [#allocation5], 1 }

</bundles_post_ra>
